<compile_context>
chip_gen: v7x
topology: tpu7x:2x2x1
jax: 0.10.0
libtpu: 0.0.40
codegen_flags: <defaults>
</compile_context>

<pallas_src>
import functools

import jax
import jax.numpy as jnp
import numpy as np
from jax.experimental import pallas as pl
from jax.experimental.pallas import tpu as pltpu


def _round_up(n, m):
    return -(-n // m) * m


def _spiking_conv_kernel(col_ref, w_ref, b_ref, spk_ref, mem_out_ref, mem_ref, *,
                         beta, threshold, t_blk, p_pad, t_total):
    """One grid step == one (batch, time-block).

    col_ref    : (K_pad, 4*t_blk*P_pad) bf16  im2col patches, pool-offset-major lane slabs
    w_ref      : (Cout_pad, K_pad)      bf16  conv weights, (kh, kw, ci)-major
    b_ref      : (Cout_pad, P_pad)      f32   conv bias (pre-broadcast; pad lanes are 0)
    spk_ref    : (Cout_pad, t_blk*P_pad) bf16 spikes for this time block (lane-dense store)
    mem_out_ref: (Cout_pad, P_pad)      f32   final membrane (written at the last time block)
    mem_ref    : (Cout_pad, P_pad)      f32   VMEM scratch: LIF membrane carried across blocks
    """
    ti = pl.program_id(1)

    @pl.when(ti == 0)
    def _():
        mem_ref[...] = jnp.zeros_like(mem_ref)

    tp = t_blk * p_pad

    # One fused MXU matmul for the whole time block and all four 2x2 pool offsets
    # (bf16 operands, f32 accumulation). Output is lane-dense: M = 4*tp lanes.
    y = jnp.dot(w_ref[...], col_ref[...], preferred_element_type=jnp.float32)

    # MaxPool2d(2): elementwise max over the four pool-offset slabs. Slab boundaries are
    # multiples of 128 lanes (P_pad % 128 == 0) -> pure vreg selection, no relayout.
    pooled = jnp.maximum(
        jnp.maximum(y[:, 0 * tp:1 * tp], y[:, 1 * tp:2 * tp]),
        jnp.maximum(y[:, 2 * tp:3 * tp], y[:, 3 * tp:4 * tp]))

    # Ragged last block: only the first n_valid timesteps update the membrane.
    n_valid = jnp.minimum(t_total - ti * t_blk, t_blk)

    bias = b_ref[...]
    mem = mem_ref[...]

    # LIF recurrence: decay + integrate, threshold, soft reset.  Static loop (t_blk is capped
    # by the wrapper) so every per-timestep slice/store is a static, 128-lane-aligned,
    # unmasked access on (Cout_pad, P_pad) dense vregs.
    for t in range(t_blk):
        cur = pooled[:, t * p_pad:(t + 1) * p_pad] + bias
        m_new = beta * mem + cur
        spk = jnp.where(m_new > threshold, 1.0, 0.0)
        spk_ref[:, t * p_pad:(t + 1) * p_pad] = spk.astype(spk_ref.dtype)
        # Padded timesteps (t >= n_valid) must not advance the membrane; their (cropped)
        # spikes are written anyway and discarded in the glue.
        mem = jnp.where(jnp.int32(t) < n_valid, m_new - spk * threshold, mem)

    mem_ref[...] = mem

    # INVARIANT: mem_out's block index is constant across ti (single writeback per batch) and
    # time is the innermost "arbitrary" grid axis; do not reorder the grid or change the
    # mem out_spec without also changing this finalization.
    @pl.when(ti == pl.num_programs(1) - 1)
    def _():
        mem_out_ref[...] = mem_ref[...]


def spiking_conv2d(x, w, b, *, beta=0.9, threshold=1.0, t_blk=None,
                   vmem_budget_bytes=24 * 1024 * 1024,
                   vmem_limit_bytes=32 * 1024 * 1024):
    """Pallas TPU implementation of SpikingConv2d.forward.

    x: (B, T, Cin, H, W) float32     (PyTorch NCHW frames over a time axis)
    w: (Cout, Cin, KH, KW) float32   (PyTorch Conv2d weight layout)
    b: (Cout,) float32
    returns: spikes (B, T, Cout, Hp, Wp), mem (B, Cout, Hp*Wp)

    Note on numerics: the conv uses bf16 operands with f32 accumulation (MXU-native).  The
    hard spike threshold can flip for membrane values within ~1e-6 of `threshold` relative to
    an f32 reference; for exact spike comparison, feed bf16-representable inputs/weights.
    """
    B, T, Cin, H, W = x.shape
    Cout, _, KH, KW = w.shape
    Ho, Wo = H - KH + 1, W - KW + 1          # VALID conv, stride 1
    Hp, Wp = Ho // 2, Wo // 2                # MaxPool2d(2), floor mode
    P, K = Hp * Wp, KH * KW * Cin
    P_pad = _round_up(P, 128)                # lane-tile aligned per-timestep slab
    Cout_pad = _round_up(Cout, 8)            # sublane aligned channels
    K_pad = _round_up(K, 8)                  # sublane aligned contraction dim

    # --- VMEM accounting for the t_blk auto-selection (per review: count everything) ---
    def vmem_bytes(tb):
        tp = tb * P_pad
        m = 4 * tp
        col_blk = _round_up(K_pad, 16) * m * 2            # bf16 col block
        spk_blk = _round_up(Cout_pad, 16) * tp * 2        # bf16 spike block
        w_blk = _round_up(Cout_pad, 16) * _round_up(K_pad, 128) * 2
        b_blk = Cout_pad * P_pad * 4
        memout_blk = Cout_pad * P_pad * 4
        mem_scratch = Cout_pad * P_pad * 4
        interm = Cout_pad * m * 4 + Cout_pad * tp * 4     # f32 matmul result + pooled headroom
        # inputs/outputs are double-buffered by the pipeline
        return (2 * (col_blk + spk_blk + w_blk + b_blk + memout_blk)
                + mem_scratch + interm)

    # Cap the static LIF unroll / pooled vreg footprint.
    cap = max(1, 16 // max(1, (Cout_pad // 8) * (P_pad // 128)))
    if t_blk is None:
        t_blk = 1
        for cand in range(min(T, cap), 0, -1):
            if vmem_bytes(cand) <= vmem_budget_bytes:
                t_blk = cand
                break

    NT = -(-T // t_blk)                       # ragged last block supported
    T_pad = NT * t_blk
    TP = t_blk * P_pad
    M = 4 * TP                                # always a multiple of 512 (MXU-friendly)

    # ---- glue (plain JAX): NCHW -> NHWC, im2col, pool-offset-major, pad, time-block ----
    xn = x.reshape(B * T, Cin, H, W).transpose(0, 2, 3, 1)               # (N, H, W, Cin)
    patches = [xn[:, kh:kh + Ho, kw:kw + Wo, :]
               for kh in range(KH) for kw in range(KW)]
    col = jnp.concatenate(patches, axis=-1)                              # (N, Ho, Wo, K)
    col = col[:, :Hp * 2, :Wp * 2, :].reshape(B * T, Hp, 2, Wp, 2, K)
    col = col.transpose(0, 2, 4, 1, 3, 5).reshape(B, T, 4, P, K)         # (B, T, 4, P, K)
    col = jnp.pad(col, ((0, 0), (0, T_pad - T), (0, 0),
                        (0, P_pad - P), (0, K_pad - K)))                 # zero-pad t, p, k
    col = col.reshape(B, NT, t_blk, 4, P_pad, K_pad).transpose(0, 1, 5, 3, 2, 4)
    col = col.reshape(B, NT, K_pad, M).astype(jnp.bfloat16)              # (B, NT, K_pad, M)

    w_col = w.transpose(0, 2, 3, 1).reshape(Cout, K)                     # (Cout, (kh,kw,ci))
    w_col = jnp.pad(w_col, ((0, Cout_pad - Cout), (0, K_pad - K))).astype(jnp.bfloat16)

    # Pre-broadcast bias; zero it on spatial pad lanes so the pad region never spikes and
    # the pad membrane stays exactly 0.
    lane_valid = (jnp.arange(P_pad) < P).astype(jnp.float32)
    b_pad = jnp.pad(b.astype(jnp.float32), (0, Cout_pad - Cout))
    b2 = b_pad[:, None] * lane_valid[None, :]                            # (Cout_pad, P_pad)

    kernel = functools.partial(_spiking_conv_kernel, beta=beta, threshold=threshold,
                               t_blk=t_blk, p_pad=P_pad, t_total=T)

    flops = 2 * B * NT * Cout_pad * M * K_pad
    bytes_accessed = (B * NT * K_pad * M * 2 + Cout_pad * K_pad * 2
                      + Cout_pad * P_pad * 4
                      + B * NT * Cout_pad * TP * 2 + B * Cout_pad * P_pad * 4)

    spk, mem = pl.pallas_call(
        kernel,
        out_shape=(jax.ShapeDtypeStruct((B, NT, Cout_pad, TP), jnp.bfloat16),
                   jax.ShapeDtypeStruct((B, Cout_pad, P_pad), jnp.float32)),
        grid=(B, NT),
        in_specs=[
            # NOTE: if a profile shows exposed DMA on the col block, add
            # pipeline_mode=pl.Buffered(3) here (v5e/v6e only; prefer larger t_blk on v7x).
            pl.BlockSpec((None, None, K_pad, M), lambda bi, ti: (bi, ti, 0, 0)),
            pl.BlockSpec((Cout_pad, K_pad), lambda bi, ti: (0, 0)),
            pl.BlockSpec((Cout_pad, P_pad), lambda bi, ti: (0, 0)),
        ],
        out_specs=(
            pl.BlockSpec((None, None, Cout_pad, TP), lambda bi, ti: (bi, ti, 0, 0)),
            pl.BlockSpec((None, Cout_pad, P_pad), lambda bi, ti: (bi, 0, 0)),
        ),
        scratch_shapes=[pltpu.VMEM((Cout_pad, P_pad), jnp.float32)],
        compiler_params=pltpu.CompilerParams(
            # batch is independent (v7x megacore); time is the membrane recurrence.
            dimension_semantics=("parallel", "arbitrary"),
            vmem_limit_bytes=vmem_limit_bytes),
        cost_estimate=pl.CostEstimate(flops=int(flops), transcendentals=0,
                                      bytes_accessed=int(bytes_accessed)),
    )(col, w_col, b2)

    # ---- glue back to the PyTorch convention ----
    spk = spk.reshape(B, NT, Cout_pad, t_blk, P_pad).transpose(0, 1, 3, 2, 4)
    spk = spk.reshape(B, T_pad, Cout_pad, P_pad)[:, :T, :Cout, :P]
    spikes = spk.astype(x.dtype).reshape(B, T, Cout, Hp, Wp)
    mem = mem[:, :Cout, :P]                                              # (B, Cout, Hp*Wp)
    return spikes, mem


def reference(x, w, b, *, beta=0.9, threshold=1.0):
    """Pure-JAX mirror of the PyTorch forward (conv -> maxpool -> LIF over time)."""
    B, T, Cin, H, W = x.shape
    Cout, _, KH, KW = w.shape
    xf = x.reshape(B * T, Cin, H, W)
    conv = jax.lax.conv_general_dilated(
        xf, w, window_strides=(1, 1), padding="VALID",
        dimension_numbers=("NCHW", "OIHW", "NCHW"),
        precision=jax.lax.Precision.HIGHEST) + b[None, :, None, None]
    N, Co, Ho, Wo = conv.shape
    Hp, Wp = Ho // 2, Wo // 2
    pooled = conv[:, :, :Hp * 2, :Wp * 2].reshape(N, Co, Hp, 2, Wp, 2).max(axis=(3, 5))
    pooled = pooled.reshape(B, T, Co, Hp * Wp)
    mem = jnp.zeros((B, Co, Hp * Wp), jnp.float32)
    spikes = []
    for t in range(T):
        mem = beta * mem + pooled[:, t]
        spk = jnp.where(mem > threshold, 1.0, 0.0)
        mem = mem - spk * threshold
        spikes.append(spk)
    spikes = jnp.stack(spikes, axis=1).reshape(B, T, Co, Hp, Wp)
    return spikes, mem


if __name__ == "__main__":
    B, T, Cin, H, W = 2, 4, 4, 16, 16
    Cout, Ksz = 8, 3
    beta, threshold = 0.9, 1.0

    key = jax.random.PRNGKey(0)
    kx, kw, kb = jax.random.split(key, 3)
    # Round inputs/params to bf16-representable values so the bf16-operand / f32-accumulate
    # MXU matmul matches the f32 reference to accumulation-ordering noise only, keeping the
    # hard spike-threshold comparison tight (see the numerics note in spiking_conv2d).
    x = jax.random.normal(kx, (B, T, Cin, H, W), jnp.float32)
    x = x.astype(jnp.bfloat16).astype(jnp.float32)
    w = (0.1 * jax.random.normal(kw, (Cout, Cin, Ksz, Ksz), jnp.float32))
    w = w.astype(jnp.bfloat16).astype(jnp.float32)
    b = (0.1 * jax.random.normal(kb, (Cout,), jnp.float32))
    b = b.astype(jnp.bfloat16).astype(jnp.float32)

    # t_blk=3 (with T=4) exercises the fused multi-timestep matmul, the membrane carry across
    # grid steps AND the ragged last time-block; production would take the auto selection.
    spikes, mem = spiking_conv2d(x, w, b, beta=beta, threshold=threshold, t_blk=3)
    jax.block_until_ready((spikes, mem))

    spikes_exp, mem_exp = reference(x, w, b, beta=beta, threshold=threshold)
    np.testing.assert_allclose(np.asarray(mem), np.asarray(mem_exp), atol=1e-4, rtol=1e-4)
    np.testing.assert_allclose(np.asarray(spikes), np.asarray(spikes_exp), atol=1e-3)

    Hp, Wp = (H - Ksz + 1) // 2, (W - Ksz + 1) // 2
    assert spikes.shape == (B, T, Cout, Hp, Wp)
    assert mem.shape == (B, Cout, Hp * Wp)
    print("KERNEL_OK")
</pallas_src>

<mosaic_0001>
module attributes {stable_mosaic.version = 11 : i64} {
  func.func @_spiking_conv_kernel(%arg0: i32, %arg1: i32, %arg2: memref<1x1x40x1536xbf16, #tpu.memory_space<vmem>>, %arg3: memref<8x40xbf16, #tpu.memory_space<vmem>>, %arg4: memref<8x128xf32, #tpu.memory_space<vmem>>, %arg5: memref<1x1x8x384xbf16, #tpu.memory_space<vmem>>, %arg6: memref<1x8x128xf32, #tpu.memory_space<vmem>>, %arg7: memref<8x128xf32, #tpu.memory_space<vmem>>) attributes {dimension_semantics = [#tpu.dimension_semantics<parallel>, #tpu.dimension_semantics<arbitrary>], iteration_bounds = array<i64: 2, 2>, scalar_prefetch = 0 : i64, scratch_operands = 1 : i64, tpu.core_type = #tpu.core_type<tc>, window_params = [{transform_indices = @transform_0, window_bounds = array<i64: 1, 1, 40, 1536>}, {pipeline_mode = #tpu.pipeline_mode<synchronous>, transform_indices = @transform_1, window_bounds = array<i64: 8, 40>}, {pipeline_mode = #tpu.pipeline_mode<synchronous>, transform_indices = @transform_2, window_bounds = array<i64: 8, 128>}, {transform_indices = @transform_3, window_bounds = array<i64: 1, 1, 8, 384>}, {transform_indices = @transform_4, window_bounds = array<i64: 1, 8, 128>}]} {
    %c0_i32 = arith.constant 0 : i32
    %0 = arith.cmpi eq, %arg1, %c0_i32 : i32
    %1 = arith.extui %0 : i1 to i32
    %c0_i32_0 = arith.constant 0 : i32
    %2 = arith.cmpi ne, %1, %c0_i32_0 : i32
    scf.if %2 {
      %cst_41 = arith.constant 0.000000e+00 : f32
      %80 = vector.broadcast %cst_41 : f32 to vector<8x128xf32>
      %c0_42 = arith.constant 0 : index
      %c0_43 = arith.constant 0 : index
      %81 = vector.load %arg7[%c0_42, %c0_43] : memref<8x128xf32, #tpu.memory_space<vmem>>, vector<8x128xf32>
      tpu.vector_store %arg7[%c0_42, %c0_43], %80 {strides = array<i32>} : memref<8x128xf32, #tpu.memory_space<vmem>>, vector<8x128xf32>,
    } else {
    }
    %c0 = arith.constant 0 : index
    %c0_1 = arith.constant 0 : index
    %3 = vector.load %arg3[%c0, %c0_1] : memref<8x40xbf16, #tpu.memory_space<vmem>>, vector<8x40xbf16>
    %c0_2 = arith.constant 0 : index
    %c0_3 = arith.constant 0 : index
    %c0_4 = arith.constant 0 : index
    %c0_5 = arith.constant 0 : index
    %4 = vector.load %arg2[%c0_2, %c0_3, %c0_4, %c0_5] : memref<1x1x40x1536xbf16, #tpu.memory_space<vmem>>, vector<1x1x40x1536xbf16>
    %5 = vector.shape_cast %4 : vector<1x1x40x1536xbf16> to vector<40x1536xbf16>
    %cst = arith.constant dense<0.000000e+00> : vector<8x1536xf32>
    %6 = tpu.matmul %3, %5, %cst {dimension_numbers = #tpu.dot_dimension_numbers<[1], [0], [0], [1], [0, 0, 1, 1], [], []>} : vector<8x40xbf16>, vector<40x1536xbf16>, vector<8x1536xf32> -> vector<8x1536xf32>
    %7 = vector.extract_strided_slice %6 {offsets = [0, 0], sizes = [8, 384], strides = [1, 1]} : vector<8x1536xf32> to vector<8x384xf32>
    %8 = vector.extract_strided_slice %6 {offsets = [0, 384], sizes = [8, 384], strides = [1, 1]} : vector<8x1536xf32> to vector<8x384xf32>
    %9 = arith.maximumf %7, %8 : vector<8x384xf32>
    %10 = vector.extract_strided_slice %6 {offsets = [0, 768], sizes = [8, 384], strides = [1, 1]} : vector<8x1536xf32> to vector<8x384xf32>
    %11 = vector.extract_strided_slice %6 {offsets = [0, 1152], sizes = [8, 384], strides = [1, 1]} : vector<8x1536xf32> to vector<8x384xf32>
    %12 = arith.maximumf %10, %11 : vector<8x384xf32>
    %13 = arith.maximumf %9, %12 : vector<8x384xf32>
    %c3_i32 = arith.constant 3 : i32
    %14 = arith.muli %arg1, %c3_i32 : i32
    %c4_i32 = arith.constant 4 : i32
    %15 = arith.subi %c4_i32, %14 : i32
    %c3_i32_6 = arith.constant 3 : i32
    %16 = arith.minsi %15, %c3_i32_6 : i32
    %c0_7 = arith.constant 0 : index
    %c0_8 = arith.constant 0 : index
    %17 = vector.load %arg4[%c0_7, %c0_8] : memref<8x128xf32, #tpu.memory_space<vmem>>, vector<8x128xf32>
    %c0_9 = arith.constant 0 : index
    %c0_10 = arith.constant 0 : index
    %18 = vector.load %arg7[%c0_9, %c0_10] : memref<8x128xf32, #tpu.memory_space<vmem>>, vector<8x128xf32>
    %19 = vector.extract_strided_slice %13 {offsets = [0, 0], sizes = [8, 128], strides = [1, 1]} : vector<8x384xf32> to vector<8x128xf32>
    %20 = arith.addf %19, %17 : vector<8x128xf32>
    %cst_11 = arith.constant 0.899999976 : f32
    %21 = vector.broadcast %cst_11 : f32 to vector<8x128xf32>
    %22 = arith.mulf %21, %18 : vector<8x128xf32>
    %23 = arith.addf %22, %20 : vector<8x128xf32>
    %cst_12 = arith.constant 1.000000e+00 : f32
    %24 = vector.broadcast %cst_12 : f32 to vector<8x128xf32>
    %25 = arith.cmpf ogt, %23, %24 : vector<8x128xf32>
    %cst_13 = arith.constant 1.000000e+00 : f32
    %cst_14 = arith.constant 0.000000e+00 : f32
    %26 = vector.broadcast %cst_13 : f32 to vector<8x128xf32>
    %27 = vector.broadcast %cst_14 : f32 to vector<8x128xf32>
    %28 = arith.select %25, %26, %27 : vector<8x128xi1>, vector<8x128xf32>
    %29 = arith.truncf %28 : vector<8x128xf32> to vector<8x128xbf16>
    %c0_15 = arith.constant 0 : index
    %c0_16 = arith.constant 0 : index
    %c0_17 = arith.constant 0 : index
    %c0_18 = arith.constant 0 : index
    %30 = vector.load %arg5[%c0_15, %c0_16, %c0_17, %c0_18] : memref<1x1x8x384xbf16, #tpu.memory_space<vmem>>, vector<1x1x8x128xbf16>
    %31 = vector.shape_cast %30 : vector<1x1x8x128xbf16> to vector<8x128xbf16>
    %32 = vector.shape_cast %29 : vector<8x128xbf16> to vector<1x1x8x128xbf16>
    tpu.vector_store %arg5[%c0_15, %c0_16, %c0_17, %c0_18], %32 {strides = array<i32>} : memref<1x1x8x384xbf16, #tpu.memory_space<vmem>>, vector<1x1x8x128xbf16>,
    %c0_i32_19 = arith.constant 0 : i32
    %33 = arith.cmpi slt, %c0_i32_19, %16 : i32
    %cst_20 = arith.constant 1.000000e+00 : f32
    %34 = vector.broadcast %cst_20 : f32 to vector<8x128xf32>
    %35 = arith.mulf %28, %34 : vector<8x128xf32>
    %36 = arith.subf %23, %35 : vector<8x128xf32>
    %37 = arith.select %33, %36, %18 : vector<8x128xf32>
    %38 = vector.extract_strided_slice %13 {offsets = [0, 128], sizes = [8, 128], strides = [1, 1]} : vector<8x384xf32> to vector<8x128xf32>
    %39 = arith.addf %38, %17 : vector<8x128xf32>
    %cst_21 = arith.constant 0.899999976 : f32
    %40 = vector.broadcast %cst_21 : f32 to vector<8x128xf32>
    %41 = arith.mulf %40, %37 : vector<8x128xf32>
    %42 = arith.addf %41, %39 : vector<8x128xf32>
    %cst_22 = arith.constant 1.000000e+00 : f32
    %43 = vector.broadcast %cst_22 : f32 to vector<8x128xf32>
    %44 = arith.cmpf ogt, %42, %43 : vector<8x128xf32>
    %cst_23 = arith.constant 1.000000e+00 : f32
    %cst_24 = arith.constant 0.000000e+00 : f32
    %45 = vector.broadcast %cst_23 : f32 to vector<8x128xf32>
    %46 = vector.broadcast %cst_24 : f32 to vector<8x128xf32>
    %47 = arith.select %44, %45, %46 : vector<8x128xi1>, vector<8x128xf32>
    %48 = arith.truncf %47 : vector<8x128xf32> to vector<8x128xbf16>
    %c0_25 = arith.constant 0 : index
    %c0_26 = arith.constant 0 : index
    %c0_27 = arith.constant 0 : index
    %c128 = arith.constant 128 : index
    %49 = vector.load %arg5[%c0_25, %c0_26, %c0_27, %c128] : memref<1x1x8x384xbf16, #tpu.memory_space<vmem>>, vector<1x1x8x128xbf16>
    %50 = vector.shape_cast %49 : vector<1x1x8x128xbf16> to vector<8x128xbf16>
    %51 = vector.shape_cast %48 : vector<8x128xbf16> to vector<1x1x8x128xbf16>
    tpu.vector_store %arg5[%c0_25, %c0_26, %c0_27, %c128], %51 {strides = array<i32>} : memref<1x1x8x384xbf16, #tpu.memory_space<vmem>>, vector<1x1x8x128xbf16>,
    %c1_i32 = arith.constant 1 : i32
    %52 = arith.cmpi slt, %c1_i32, %16 : i32
    %cst_28 = arith.constant 1.000000e+00 : f32
    %53 = vector.broadcast %cst_28 : f32 to vector<8x128xf32>
    %54 = arith.mulf %47, %53 : vector<8x128xf32>
    %55 = arith.subf %42, %54 : vector<8x128xf32>
    %56 = arith.select %52, %55, %37 : vector<8x128xf32>
    %57 = vector.extract_strided_slice %13 {offsets = [0, 256], sizes = [8, 128], strides = [1, 1]} : vector<8x384xf32> to vector<8x128xf32>
    %58 = arith.addf %57, %17 : vector<8x128xf32>
    %cst_29 = arith.constant 0.899999976 : f32
    %59 = vector.broadcast %cst_29 : f32 to vector<8x128xf32>
    %60 = arith.mulf %59, %56 : vector<8x128xf32>
    %61 = arith.addf %60, %58 : vector<8x128xf32>
    %cst_30 = arith.constant 1.000000e+00 : f32
    %62 = vector.broadcast %cst_30 : f32 to vector<8x128xf32>
    %63 = arith.cmpf ogt, %61, %62 : vector<8x128xf32>
    %cst_31 = arith.constant 1.000000e+00 : f32
    %cst_32 = arith.constant 0.000000e+00 : f32
    %64 = vector.broadcast %cst_31 : f32 to vector<8x128xf32>
    %65 = vector.broadcast %cst_32 : f32 to vector<8x128xf32>
    %66 = arith.select %63, %64, %65 : vector<8x128xi1>, vector<8x128xf32>
    %67 = arith.truncf %66 : vector<8x128xf32> to vector<8x128xbf16>
    %c0_33 = arith.constant 0 : index
    %c0_34 = arith.constant 0 : index
    %c0_35 = arith.constant 0 : index
    %c256 = arith.constant 256 : index
    %68 = vector.load %arg5[%c0_33, %c0_34, %c0_35, %c256] : memref<1x1x8x384xbf16, #tpu.memory_space<vmem>>, vector<1x1x8x128xbf16>
    %69 = vector.shape_cast %68 : vector<1x1x8x128xbf16> to vector<8x128xbf16>
    %70 = vector.shape_cast %67 : vector<8x128xbf16> to vector<1x1x8x128xbf16>
    tpu.vector_store %arg5[%c0_33, %c0_34, %c0_35, %c256], %70 {strides = array<i32>} : memref<1x1x8x384xbf16, #tpu.memory_space<vmem>>, vector<1x1x8x128xbf16>,
    %c2_i32 = arith.constant 2 : i32
    %71 = arith.cmpi slt, %c2_i32, %16 : i32
    %cst_36 = arith.constant 1.000000e+00 : f32
    %72 = vector.broadcast %cst_36 : f32 to vector<8x128xf32>
    %73 = arith.mulf %66, %72 : vector<8x128xf32>
    %74 = arith.subf %61, %73 : vector<8x128xf32>
    %75 = arith.select %71, %74, %56 : vector<8x128xf32>
    %c0_37 = arith.constant 0 : index
    %c0_38 = arith.constant 0 : index
    %76 = vector.load %arg7[%c0_37, %c0_38] : memref<8x128xf32, #tpu.memory_space<vmem>>, vector<8x128xf32>
    tpu.vector_store %arg7[%c0_37, %c0_38], %75 {strides = array<i32>} : memref<8x128xf32, #tpu.memory_space<vmem>>, vector<8x128xf32>,
    %c1_i32_39 = arith.constant 1 : i32
    %77 = arith.cmpi eq, %arg1, %c1_i32_39 : i32
    %78 = arith.extui %77 : i1 to i32
    %c0_i32_40 = arith.constant 0 : i32
    %79 = arith.cmpi ne, %78, %c0_i32_40 : i32
    scf.if %79 {
      %c0_41 = arith.constant 0 : index
      %c0_42 = arith.constant 0 : index
      %80 = vector.load %arg7[%c0_41, %c0_42] : memref<8x128xf32, #tpu.memory_space<vmem>>, vector<8x128xf32>
      %c0_43 = arith.constant 0 : index
      %c0_44 = arith.constant 0 : index
      %c0_45 = arith.constant 0 : index
      %81 = vector.load %arg6[%c0_43, %c0_44, %c0_45] : memref<1x8x128xf32, #tpu.memory_space<vmem>>, vector<1x8x128xf32>
      %82 = vector.shape_cast %81 : vector<1x8x128xf32> to vector<8x128xf32>
      %83 = vector.shape_cast %80 : vector<8x128xf32> to vector<1x8x128xf32>
      tpu.vector_store %arg6[%c0_43, %c0_44, %c0_45], %83 {strides = array<i32>} : memref<1x8x128xf32, #tpu.memory_space<vmem>>, vector<1x8x128xf32>,
    } else {
    }
    return
  }
  func.func @transform_0(%arg0: i32, %arg1: i32) -> (i32, i32, i32, i32) {
    %c0_i32 = arith.constant 0 : i32
    %c0_i32_0 = arith.constant 0 : i32
    %c0_i32_1 = arith.constant 0 : i32
    return %arg0, %arg1, %c0_i32, %c0_i32_0 : i32, i32, i32, i32
  }
  func.func @transform_1(%arg0: i32, %arg1: i32) -> (i32, i32) {
    %c0_i32 = arith.constant 0 : i32
    %c0_i32_0 = arith.constant 0 : i32
    %c0_i32_1 = arith.constant 0 : i32
    return %c0_i32, %c0_i32_0 : i32, i32
  }
  func.func @transform_2(%arg0: i32, %arg1: i32) -> (i32, i32) {
    %c0_i32 = arith.constant 0 : i32
    %c0_i32_0 = arith.constant 0 : i32
    %c0_i32_1 = arith.constant 0 : i32
    return %c0_i32, %c0_i32_0 : i32, i32
  }
  func.func @transform_3(%arg0: i32, %arg1: i32) -> (i32, i32, i32, i32) {
    %c0_i32 = arith.constant 0 : i32
    %c0_i32_0 = arith.constant 0 : i32
    %c0_i32_1 = arith.constant 0 : i32
    return %arg0, %arg1, %c0_i32, %c0_i32_0 : i32, i32, i32, i32
  }
  func.func @transform_4(%arg0: i32, %arg1: i32) -> (i32, i32, i32) {
    %c0_i32 = arith.constant 0 : i32
    %c0_i32_0 = arith.constant 0 : i32
    %c0_i32_1 = arith.constant 0 : i32
    return %arg0, %c0_i32, %c0_i32_0 : i32, i32, i32
  }
}

</mosaic_0001>

<bundles_post_ra>
// kernel: tpu_custom_call.1
= control target key start
LH: loop header
LB: loop body
LE: loop exit
PB: predicated region body
PF: predicated region fallthrough
CT: control target
= control target key end

     0   :  { %s1966_s0 = inlined_call_operand.hbm [shape: bf16[2,2,40,1536], index: 0, kind: input, shape index: {}]   ;;  %s1967_s1 = inlined_call_operand.hbm [shape: bf16[8,40], index: 1, kind: input, shape index: {}]   ;;  %s1968_s2 = inlined_call_operand.hbm [shape: f32[8,128], index: 2, kind: input, shape index: {}]   ;;  %s1969_s3 = inlined_call_operand.hbm [shape: bf16[2,2,8,384], index: 3, kind: output, shape index: {0}]   ;;  %s1970_s4 = inlined_call_operand.hbm [shape: f32[2,8,128], index: 4, kind: output, shape index: {1}]  }
   0x1   :  { %1988 = sst [smem:[#allocation24_spill]] %s1967_s1 }
   0x2   :  { %1989 = sst [smem:[#allocation25_spill]] %s1968_s2 }
   0x3   :  { %10 = vsyncpa [#allocation4], 0 }
   0x4   :  { %12 = vsyncpa [#allocation4 + $0x1], 0 }
   0x5   :  { %13 = vsyncpa [#allocation7], 0 }
   0x6   :  { %14 = vsyncpa [#allocation5], 0 }
   0x7   :  { %16 = vsyncpa [#allocation5 + $0x1], 0 }
   0x8   :  { %17 = vsyncpa [#allocation11], 0 }
   0x9   :  { %19 = vsyncpa [#allocation11 + $0x1], 0  ;;  %s1534_s15 = smov 0   ;;  %s1536_s16 = smov 0  }
   0xa   :  { %s1538_s17 = smov 0   ;;  %s1540_s18 = smov 0  }
   0xb   :  { %s1542_s19 = smov 0   ;;  %s1544_s20 = smov 0  }
   0xc   :  { %s1546_s21 = smov 0   ;;  %s1548_s22 = smov 0  }
   0xd   :  { %s1550_s23 = smov 0   ;;  %s1552_s24 = smov 0  }
   0xe   :  { %s1554_s25 = smov 0  }
   0xf LB: > { %1990 = sst [smem:[#allocation16_spill]] %s1457_s15  ;;  %s978_s26 = sadd.s32 4294967295, %s1497_s25   ;;  %s1497_s25 = sphi %s1554_s25, %s25_s25   ;;  %s1493_s24 = sphi %s1552_s24, %s2037_s24   ;;  %s1489_s23 = sphi %s1550_s23, %s2036_s23   ;;  %s1485_s22 = sphi %s1548_s22, %s2035_s22   ;;  %s1481_s21 = sphi %s1546_s21, %s2026_s21   ;;  %s1477_s20 = sphi %s1544_s20, %s2034_s20   ;;  %s1473_s19 = sphi %s1542_s19, %s2033_s19   ;;  %s1469_s18 = sphi %s1540_s18, %s2032_s18   ;;  %s1465_s17 = sphi %s1538_s17, %s2031_s17   ;;  %s1461_s16 = sphi %s1536_s16, %s2030_s16   ;;  %s1457_s15 = sphi %s1534_s15, %s2029_s15  }
  0x10   : > { %1991 = sst [smem:[#allocation17_spill]] %s1469_s18  ;;  %s979_s27 = sadd.s32 4294967294, %s1497_s25  }
  0x11   : > { %1992 = sst [smem:[#allocation18_spill]] %s1489_s23  ;;  %p53_p0 = scmp.ne.s32.totalorder %s1477_s20, %s1473_s19 }
  0x12   : > { %1993 = sst [smem:[#allocation19_spill]] %s1497_s25  ;;  %p54_p1 = scmp.eq.s32.totalorder %s1497_s25, 0 }
  0x13   : > { %p59_p2 = scmp.ne.s32.totalorder %s1473_s19, %s1469_s18  ;;  %p1597_p3 = scmp.eq.s32.totalorder %s978_s26, 0 }
  0x14   : > { %p127_p4 = scmp.eq.s32.totalorder %s978_s26, 3  ;;  %p1601_p5 = por %p54_p1, %p53_p0 }
  0x15   : > { %s1994_s29 = scalar_select %p1597_p3, 1, 0 }
  0x16   : > { %p133_p6 = scmp.eq.s32.totalorder %s979_s27, 3  ;;  %p1607_p7 = por %p1597_p3, %p59_p2 }
  0x17   : > { %p1611_p8 = por %p127_p4, %p53_p0  ;;  %p152_p10 = scmp.ne.s32.totalorder %s1465_s17, %s1461_s16 }
  0x18   : > { %s1996_s5 = scalar_select %p1607_p7, 1, 0 }
  0x19   : > { %s1997_s6 = scalar_select %p1611_p8, 1, 0 }
  0x1a   : > { %p1615_p9 = por %p133_p6, %p59_p2  ;;  %p158_p11 = scmp.ne.s32.totalorder %s1461_s16, %s1457_s15 }
  0x1b   : > { %p980_p12 = scmp.ge.s32.totalorder %s1497_s25, 1  ;;  %p166_p13 = scmp.lt.s32.totalorder %s1497_s25, 5 }
  0x1c   : > { %s1998_s7 = scalar_select %p1615_p9, 1, 0 }
  0x1d   : > { %p1626_p1 = por %p152_p10, %p127_p4  ;;  %p1630_p7 = por %p158_p11, %p133_p6 }
  0x1e   : > { %1999 = sst [smem:[#allocation20_spill]] %s1998_s7  ;;  %p1634_p0 = pnand %p980_p12, %p166_p13 }
  0x1f   : > { %s2000_s9 = scalar_select %p1626_p1, 1, 0 }
  0x20   : > { %s2002_s10 = scalar_select %p1630_p7, 1, 0 }
  0x21   : > { %2001 = sst [smem:[#allocation21_spill]] %s2000_s9  ;;  %p1086_p2 = pneg %p1634_p0 }
  0x22   : > { %2003 = sst [smem:[#allocation22_spill]] %s2002_s10  ;;  %s1499_s12 = smov [#allocation6]  }
  0x23   : > { %s2004_s11 = scalar_select %p1634_p0, 1, 0 }
  0x24   : > { %s179_s13 = sshll.u32 %s1499_s12, 4  ;;  %p1106_p9 = scmp.lt.s32.totalorder %s1497_s25, 4  ;;  %s180_s13 = int_to_ptr.vmem [resolvable:$true] %s179_s13 }
  0x25   : > { %p1643_p4 = pnand %p1086_p2, %p1597_p3  ;;  %s1500_s27 = smov [#allocation8]  }
  0x26   : > { %p1649_p6 = pnand %p1106_p9, %p1601_p5  ;;  %s190_s28 = sshll.u32 %s1500_s27, 4  ;;  %s1653_s28 = int_to_ptr.vmem [resolvable:$true] %s190_s28 }
  0x27   : > { %s2007_s1 = sld [smem:[#allocation24_spill]]  ;;  %p1255_p11 = pneg %p1643_p4 }
  0x28   : > { %s2006_s26 = scalar_select %p1649_p6, 1, 0 }
  0x2d   : > { %s1253_s10 = scalar_lea.hbm %s2007_s1, 64 }
  0x2e   : > { %p1254_p10 = scmp.ne.s32.totalorder %s2007_s1, %s1253_s10  ;;  %p1260_p12 = scmp.lt.u32.totalorder %s1253_s10, %s2007_s1 }
  0x30   : > { %p1256_p5 = pnand %p1255_p11, %p1254_p10 }
  0x32   : > { %p1257_p9 = pneg %p1256_p5 }
  0x34   : > { %p1262_p13 = pnand %p1260_p12, %p1257_p9 }
  0x36   : > { %1265 = shalt.err (!%p1262_p13)
}
  0x37   : > { %s1266_s27 = scalar_lea.vmem %s180_s13, 64  ;;  %p1274_p8 = scmp.lt.s32.totalorder %s180_s13, %s180_s13 }
  0x38   : > { %p1267_p2 = scmp.ne.s32.totalorder %s180_s13, %s1266_s27  ;;  %p1275_p3 = scmp.lt.s32.totalorder %s1266_s27, %s1266_s27 }
  0x3a   : > { %p1269_p7 = pnand %p1267_p2, %p1255_p11  ;;  %p1276_p0 = por %p1275_p3, %p1274_p8 }
  0x3c   : > { %p1270_p1 = pneg %p1269_p7 }
  0x3e   : > { %p1277_p6 = pnand %p1276_p0, %p1270_p1 }
  0x40   : > { %1280 = shalt.err (!%p1277_p6)
}
  0x41   : > { %1089 = dma.hbm_to_vmem [thread:$0]  (!%p1643_p4), %s2007_s1, 64, %s180_s13, [#allocation7]  }
  0x42   : > { %s2008_s2 = sld [smem:[#allocation25_spill]] }
  0x48   : > { %s1281_s10 = scalar_lea.hbm %s2008_s2, 128 }
  0x49   : > { %p1282_p7 = scmp.ne.s32.totalorder %s2008_s2, %s1281_s10  ;;  %p1288_p1 = scmp.lt.u32.totalorder %s1281_s10, %s2008_s2 }
  0x4b   : > { %p1284_p3 = pnand %p1282_p7, %p1255_p11 }
  0x4d   : > { %p1285_p8 = pneg %p1284_p3 }
  0x4f   : > { %p1290_p0 = pnand %p1288_p1, %p1285_p8 }
  0x51   : > { %1293 = shalt.err (!%p1290_p0)
}
  0x52   : > { %s1294_s13 = scalar_lea.vmem %s1653_s28, 128  ;;  %p1302_p9 = scmp.lt.s32.totalorder %s1653_s28, %s1653_s28 }
  0x53   : > { %p1295_p6 = scmp.ne.s32.totalorder %s1653_s28, %s1294_s13  ;;  %p1303_p12 = scmp.lt.s32.totalorder %s1294_s13, %s1294_s13 }
  0x55   : > { %p1297_p10 = pnand %p1295_p6, %p1255_p11  ;;  %p1304_p13 = por %p1303_p12, %p1302_p9 }
  0x57   : > { %p1298_p5 = pneg %p1297_p10 }
  0x59   : > { %p1305_p2 = pnand %p1304_p13, %p1298_p5 }
  0x5b   : > { %1308 = shalt.err (!%p1305_p2)
}
  0x5c   : > { %1092 = dma.hbm_to_vmem [thread:$0]  (!%p1643_p4), %s2008_s2, 128, %s1653_s28, [#allocation7]  }
  0x5d   : > { %s34_s7 = sadd.s32 1, %s1489_s23  ;;  %s37_s18 = sadd.s32 1, %s1493_s24 }
  0x5e   : > { %p35_p11 = scmp.ge.s32.totalorder %s34_s7, 2  ;;  %s201_s8 = sand.u32 1, %s1477_s20  }
  0x5f   : > { %s1066_s14 = smul.u32 60, %s1489_s23  ;;  %s2011_s9 = sadd.s32 1, %s1477_s20 }
  0x60   : > { %s2039_s7 = smov (%p35_p11, %s34_s7), 0  ;;  %s2041_s18 = smov (!%p35_p11, %s37_s18), %s1493_s24 }
  0x61   : > { %2009 = sst [smem:[#allocation23_spill]] %s2039_s7  ;;  %s42_s10 = ssub.s32 %s1489_s23, %s2039_s7 }
  0x62   : > { %p39_p7 = scmp.ge.s32.totalorder %s2041_s18, 2  ;;  %s1065_s12 = smul.u32 240, %s201_s8 }
  0x63   : > { %s1067_s30 = smul.u32 120, %s1493_s24  ;;  %s2010_s7 = sadd.s32 1, %s1465_s17 }
  0x64   : > { %s2043_s18 = smov (%p39_p7, %s2041_s18), 0  ;;  %p2012_p1 = scmp.ne.s32.totalorder %s2006_s26, 0 }
  0x65   : > { %s211_s28 = sadd.s32 %s1067_s30, %s1066_s14  ;;  %s41_s27 = ssub.s32 %s1493_s24, %s2043_s18 }
  0x66   : > { %s984_s13 = sshll.u32 %s211_s28, 6  ;;  %s43_s25 = sor.u32 %s42_s10, %s41_s27 }
  0x67   : > { %p140_p4 = scmp.eq.s32.totalorder %s41_s27, 0  ;;  %p44_p3 = scmp.eq.s32.totalorder %s43_s25, 0 }
  0x68   : > { %s1719_s2 = scalar_lea.hbm %s1966_s0, %s984_s13  ;;  %s205_s30 = scalar_lea.vmem [#allocation3], %s1065_s12 }
  0x69   : > { %s1724_s23 = scalar_select %p140_p4, %s1465_s17, %s2010_s7  }
  0x6a   : > { %s1729_s14 = scalar_select %p44_p3, %s1477_s20, %s2011_s9  }
  0x6b   : > { %s214_s28 = sshll.u32 %s205_s30, 4  ;;  %s1733_s10 = scalar_lea.sflag [#allocation4], %s201_s8  ;;  %s1731_s28 = int_to_ptr.vmem [resolvable:$true] %s214_s28 }
  0x6c   : > { %s1309_s27 = scalar_lea.hbm %s1719_s2, 3840  ;;  %p1311_p0 = pneg %p2012_p1 }
  0x6d   : > { %p1310_p8 = scmp.ne.s32.totalorder %s1719_s2, %s1309_s27  ;;  %s1314_s13 = scalar_lea.hbm %s1966_s0, 15360 }
  0x6e   : > { %p1315_p5 = scmp.lt.u32.totalorder %s1719_s2, %s1966_s0  ;;  %p1316_p9 = scmp.lt.u32.totalorder %s1314_s13, %s1309_s27 }
  0x6f   : > { %p1312_p6 = pnand %p1311_p0, %p1310_p8  ;;  %p1318_p13 = scmp.lt.u32.totalorder %s1309_s27, %s1719_s2 }
  0x70   : > { %p1317_p12 = por %p1316_p9, %p1315_p5 }
  0x71   : > { %p1313_p10 = pneg %p1312_p6 }
  0x72   : > { %p1319_p2 = por %p1318_p13, %p1317_p12 }
  0x74   : > { %p1320_p11 = pnand %p1319_p2, %p1313_p10 }
  0x76   : > { %1323 = shalt.err (!%p1320_p11)
}
  0x77   : > { %s1324_s8 = scalar_lea.vmem %s1731_s28, 3840  ;;  %s1501_s12 = smov [#allocation3]  }
  0x78   : > { %p1325_p7 = scmp.ne.s32.totalorder %s1731_s28, %s1324_s8  ;;  %s1329_s15 = sshll.u32 %s1501_s12, 4  ;;  %s1330_s15 = int_to_ptr.vmem [resolvable:$false] %s1329_s15 }
  0x79   : > { %s1331_s30 = scalar_lea.vmem %s1330_s15, 7680  ;;  %p1332_p8 = scmp.lt.s32.totalorder %s1731_s28, %s1330_s15 }
  0x7a   : > { %p1327_p4 = pnand %p1325_p7, %p1311_p0  ;;  %p1333_p6 = scmp.lt.s32.totalorder %s1331_s30, %s1324_s8 }
  0x7c   : > { %p1328_p3 = pneg %p1327_p4  ;;  %p1334_p5 = por %p1333_p6, %p1332_p8 }
  0x7e   : > { %p1335_p9 = pnand %p1334_p5, %p1328_p3 }
  0x80   : > { %1338 = shalt.err (!%p1335_p9)
}
  0x81   : > { %s1502_s27 = smov 768   ;;  %s1503_s1 = smov 48  }
  0x82   : > { %1096 = dma.hbm_to_vmem [thread:$0]  (!%p2012_p1), %s1719_s2, 3840, %s1731_s28, %s1733_s10, %s1502_s27, %s1502_s27, %s1503_s1  }
  0x83   : > { %p2013_p0 = scmp.ne.s32.totalorder %s2004_s11, 0 }
  0x84   : > { %s1764_s7 = sand.u32 (!%p2013_p0), 1, %s1473_s19   ;;  %p2014_p10 = scmp.ne.s32.totalorder (!%p2013_p0), %s1996_s5, 0 }
  0x85   : > { %226 = sbr.rel (%p2013_p0) target bundleno = 498 (0x1f2), region = 32  ;;  %s229_s9 = scalar_lea.sflag (!%p2013_p0), [#allocation4], %s1764_s7 }
  0x86   : > { %s1068_s13 = smul.u32 (!%p2013_p0), 240, %s1764_s7 }
  0x88   : > { %s1768_s25 = scalar_lea.vmem (!%p2013_p0), [#allocation3], %s1068_s13 }
  0x8c   : > { %1440 = dma.done.wait (%p2014_p10), %s229_s9, 3840  }
  0x8d   : > { %1442 = vsyncadd (%p2014_p10), %s229_s9, 4294963456  ;;  %p2015_p1 = scmp.ne.s32.totalorder %s1994_s29, 0 }
  0x8f   : > { %1444 = dma.done.wait (%p2015_p1), [#allocation7], 192  }
  0x90   : > { %1446 = vsyncadd (%p2015_p1), [#allocation7], 4294967104  ;;  %s1069_s2 = smul.u32 12, %s1764_s7  ;;  %s267_s11 = sand.u32 1, %s1461_s16  }
  0x91   : > { %s1782_s26 = sshll.u32 %s267_s11, 3  ;;  %p989_p12 = scmp.ne.s32.totalorder %s1481_s21, 0 }
  0x92   : > { %s1784_s28 = scalar_lea.vmem [#allocation9], %s1069_s2  ;;  %s269_s10 = scalar_lea.vmem [#allocation10], %s1782_s26  ;;  %v1504_v0 = vmov (!%p989_p12), 0.0  }
  0x93   : > { %274 = sbr.rel (%p989_p12) target bundleno = 154 (0x9a), region = 48  ;;  %275 = vst [vmem:[#allocation2] sm:$0xff] (!%p989_p12), %v1504_v0 }
  0x9a PF: > { %v1205_v1 = vld [vmem:[%s1768_s25 + $0x4] ss:$48 sps:$4 sm:$0xff]   ;;  %v1207_v2 = vld [vmem:[%s1768_s25 + $0xc] ss:$48 sps:$4 sm:$0xff]   ;;  %v1505_v3 = vmov 0   ;;  %vm461_vm0 = vcmask 1043456  }
  0x9b   : > { %530 = vmatprep.mubr.bf16.mxu0 %v1505_v3  ;;  %571 = vmatprep.mubr.bf16.mxu1 %v1505_v3  ;;  %v1209_v4 = vld [vmem:[%s1768_s25] ss:$48 sps:$4 sm:$0xff]   ;;  %v1210_v5 = vld [vmem:[%s1768_s25 + $0x8] ss:$48 sps:$4 sm:$0xff]   ;;  %v1211_v6 = vld [vmem:[%s1768_s25 + $0x64] ss:$48 sps:$4 sm:$0xff]  }
  0x9c   : > { %498 = vmatprep.subr.bf16.mxu0 %v1205_v1  ;;  %539 = vmatprep.subr.bf16.mxu1 %v1207_v2  ;;  %v1213_v7 = vld [vmem:[%s1768_s25 + $0x6c] ss:$48 sps:$4 sm:$0xff]   ;;  %v1215_v8 = vld [vmem:[%s1768_s25 + $0x60] ss:$48 sps:$4 sm:$0xff]   ;;  %v1216_v9 = vld [vmem:[%s1768_s25 + $0x68] ss:$48 sps:$4 sm:$0xff]  }
  0x9d   : > { %499 = vmatpush1.bf16.msra.mxu0 %v1209_v4  ;;  %540 = vmatpush1.bf16.msra.mxu1 %v1210_v5  ;;  %v301_v10 = vld [vmem:[%s1768_s25 + $0xc0] sm:$0xff]  ;;  %v302_v11 = vld [vmem:[%s1768_s25 + $0xc8] sm:$0xff]  ;;  %vm457_vm1 = vcmask 326656   ;;  %v303_v25 = vld [vmem:[%s1768_s25 + $0xd0] sm:$0xff]  ;;  %s753_s29 = smul.u32 3, %s1481_s21  ;;  %p1053_p7 = scmp.ne.s32.totalorder %s1481_s21, 1 }
  0x9e   : > { %500 = vmatprep.subr.bf16.mxu0 %v1211_v6  ;;  %541 = vmatprep.subr.bf16.mxu1 %v1213_v7  ;;  %v1015_v12 = vcombine.high %v301_v10, %v301_v10  ;;  %v1017_v13 = vcombine.high %v302_v11, %v302_v11  ;;  %v1014_v14 = vcombine.low %v301_v10, %v301_v10  ;;  %v1223_v16 = vld [vmem:[%s1768_s25 + $0x14] ss:$48 sps:$4 sm:$0xff]   ;;  %v1226_v19 = vld [vmem:[%s1768_s25 + $0x1c] ss:$48 sps:$4 sm:$0xff]   ;;  %v1806_v20 = vld [vmem:[#allocation6] sm:$0xf] }
  0x9f   : > { %v1016_v15 = vcombine.low %v302_v11, %v302_v11  ;;  %v1221_v21 = vld [vmem:[%s1768_s25 + $0x10] ss:$48 sps:$4 sm:$0xff]   ;;  %v1224_v22 = vld [vmem:[%s1768_s25 + $0x18] ss:$48 sps:$4 sm:$0xff]   ;;  %v1229_v23 = vld [vmem:[%s1768_s25 + $0x74] ss:$48 sps:$4 sm:$0xff]   ;;  %v1019_v29 = vcombine.high %v303_v25, %v303_v25  ;;  %v1018_v31 = vcombine.low %v303_v25, %v303_v25 }
  0xa0   : > { %v463_v17 = vsel %vm461_vm0, %v1014_v14, 0  ;;  %v1232_v24 = vld [vmem:[%s1768_s25 + $0x7c] ss:$48 sps:$4 sm:$0xff]   ;;  %v1227_v27 = vld [vmem:[%s1768_s25 + $0x70] ss:$48 sps:$4 sm:$0xff]   ;;  %s1853_s5 = ssub.s32 4, %s753_s29 }
  0xa1   : > { %501 = vmatpush1.bf16.msra.mxu0 %v1215_v8  ;;  %542 = vmatpush1.bf16.msra.mxu1 %v1216_v9  ;;  %v469_v18 = vsel %vm461_vm0, %v1016_v15, 0  ;;  %v304_v26 = vld [vmem:[%s1768_s25 + $0xd8] sm:$0xff]  ;;  %v475_v33 = vsel %vm461_vm0, %v1018_v31, 0  ;;  %v1239_v35 = vld [vmem:[%s1768_s25 + $0x24] ss:$48 sps:$4 sm:$0xff]   ;;  %v306_v42 = vld [vmem:[%s1768_s25 + $0xe8] sm:$0xff] }
  0xa2   : > { %1026 = vmatprep.subr.msk.bf16.mxu0 %vm461_vm0, %v1015_v12  ;;  %1028 = vmatprep.subr.msk.bf16.mxu1 %vm461_vm0, %v1017_v13  ;;  %v1230_v28 = vld [vmem:[%s1768_s25 + $0x78] ss:$48 sps:$4 sm:$0xff]   ;;  %v1021_v30 = vcombine.high %v304_v26, %v304_v26  ;;  %v1020_v32 = vcombine.low %v304_v26, %v304_v26  ;;  %v1242_v36 = vld [vmem:[%s1768_s25 + $0x2c] ss:$48 sps:$4 sm:$0xff]   ;;  %v1237_v37 = vld [vmem:[%s1768_s25 + $0x20] ss:$48 sps:$4 sm:$0xff]   ;;  %v1025_v46 = vcombine.high %v306_v42, %v306_v42 }
  0xa3   : > { %v1240_v38 = vld [vmem:[%s1768_s25 + $0x28] ss:$48 sps:$4 sm:$0xff]   ;;  %v1245_v39 = vld [vmem:[%s1768_s25 + $0x84] ss:$48 sps:$4 sm:$0xff]   ;;  %v1248_v40 = vld [vmem:[%s1768_s25 + $0x8c] ss:$48 sps:$4 sm:$0xff]   ;;  %v1024_v48 = vcombine.low %v306_v42, %v306_v42 }
  0xa4   : > { %v481_v34 = vsel %vm461_vm0, %v1020_v32, 0  ;;  %v305_v41 = vld [vmem:[%s1768_s25 + $0xe0] sm:$0xff]  ;;  %v1246_v44 = vld [vmem:[%s1768_s25 + $0x88] ss:$48 sps:$4 sm:$0xff]   ;;  %p1038_p13 = scmp.gt.s32.totalorder %s1853_s5, 0  ;;  %p1043_p2 = scmp.gt.s32.totalorder %s1853_s5, 1 }
  0xa5   : > { %503 = vmatpush1.bf16.msra.mxu0 %v463_v17  ;;  %544 = vmatpush1.bf16.msra.mxu1 %v469_v18  ;;  %v1243_v43 = vld [vmem:[%s1768_s25 + $0x80] ss:$48 sps:$4 sm:$0xff]   ;;  %v1023_v45 = vcombine.high %v305_v41, %v305_v41  ;;  %v1022_v47 = vcombine.low %v305_v41, %v305_v41  ;;  %v493_v50 = vsel %vm461_vm0, %v1024_v48, 0  ;;  %v758_v10 = vld [vmem:[#allocation2] sm:$0xff]  ;;  %v757_v17 = vld [vmem:[#allocation8] sm:$0xff]  ;;  %v1506_v26 = vmov 0.0  }
  0xa6   : > { %580 = vmatprep.subr.bf16.mxu0 %v1223_v16  ;;  %621 = vmatprep.subr.bf16.mxu1 %v1226_v19  ;;  %s1060_s8 = scalar_select %p1038_p13, 1, 0 }
  0xa7   : > { %v487_v49 = vsel %vm461_vm0, %v1022_v47, 0  ;;  %s1062_s12 = scalar_select %p1043_p2, 1, 0 }
  0xa8   : > { %1027 = vmatmul.mubr.msk.bf16.vlgmr.msra.gmra.mrb[0].mxu0 %vm457_vm1, %v1806_v20  ;;  %1029 = vmatmul.mubr.msk.bf16.vlgmr.msra.gmra.mrb[0].mxu1 %vm457_vm1, %v1806_v20  ;;  %v769_v25 = vstv %s1060_s8  ;;  %p1048_p11 = scmp.gt.s32.totalorder %s1853_s5, 2 }
  0xa9   : > { %581 = vmatpush1.bf16.msra.mxu0 %v1221_v21  ;;  %622 = vmatpush1.bf16.msra.mxu1 %v1224_v22  ;;  %v760_v21 = vmul.f32 0.9, %v758_v10  ;;  %vm770_vm3 = vcmp.eq.s32.totalorder %v769_v25, 1 }
  0xaa   : > { %582 = vmatprep.subr.bf16.mxu0 %v1229_v23  ;;  %623 = vmatprep.subr.bf16.mxu1 %v1232_v24  ;;  %s1064_s15 = scalar_select %p1048_p11, 1, 0 }
  0xab   : > { %612 = vmatprep.mubr.bf16.mxu0 %v1505_v3  ;;  %653 = vmatprep.mubr.bf16.mxu1 %v1505_v3 }
  0xac   : > { %v795_v42 = vstv %s1064_s15 }
  0xad   : > { %583 = vmatpush1.bf16.msra.mxu0 %v1227_v27  ;;  %624 = vmatpush1.bf16.msra.mxu1 %v1230_v28  ;;  %vm796_vm7 = vcmp.eq.s32.totalorder %v795_v42, 1 }
  0xae   : > { %1030 = vmatprep.subr.msk.bf16.mxu0 %vm461_vm0, %v1019_v29  ;;  %1032 = vmatprep.subr.msk.bf16.mxu1 %vm461_vm0, %v1021_v30 }
  0xb1   : > { %585 = vmatpush1.bf16.msra.mxu0 %v475_v33  ;;  %626 = vmatpush1.bf16.msra.mxu1 %v481_v34  ;;  %v782_v34 = vstv %s1062_s12 }
  0xb2   : > { %662 = vmatprep.subr.bf16.mxu0 %v1239_v35  ;;  %703 = vmatprep.subr.bf16.mxu1 %v1242_v36  ;;  %vm783_vm5 = vcmp.eq.s32.totalorder %v782_v34, 1 }
  0xb4   : > { %1031 = vmatmul.mubr.msk.bf16.vlgmr.msra.gmra.mrb[4].mxu0 %vm457_vm1, %v1806_v20  ;;  %1033 = vmatmul.mubr.msk.bf16.vlgmr.msra.gmra.mrb[4].mxu1 %vm457_vm1, %v1806_v20 }
  0xb5   : > { %663 = vmatpush1.bf16.msra.mxu0 %v1237_v37  ;;  %704 = vmatpush1.bf16.msra.mxu1 %v1240_v38 }
  0xb6   : > { %664 = vmatprep.subr.bf16.mxu0 %v1245_v39  ;;  %705 = vmatprep.subr.bf16.mxu1 %v1248_v40 }
  0xb7   : > { %694 = vmatprep.mubr.bf16.mxu0 %v1505_v3  ;;  %735 = vmatprep.mubr.bf16.mxu1 %v1505_v3 }
  0xb9   : > { %665 = vmatpush1.bf16.msra.mxu0 %v1243_v43  ;;  %706 = vmatpush1.bf16.msra.mxu1 %v1246_v44 }
  0xba   : > { %1034 = vmatprep.subr.msk.bf16.mxu0 %vm461_vm0, %v1023_v45  ;;  %1036 = vmatprep.subr.msk.bf16.mxu1 %vm461_vm0, %v1025_v46 }
  0xbd   : > { %667 = vmatpush1.bf16.msra.mxu0 %v487_v49  ;;  %708 = vmatpush1.bf16.msra.mxu1 %v493_v50 }
  0xc0   : > { %1035 = vmatmul.mubr.msk.bf16.vlgmr.msra.gmra.mrb[8].mxu0 %vm457_vm1, %v1806_v20  ;;  %1037 = vmatmul.mubr.msk.bf16.vlgmr.msra.gmra.mrb[8].mxu1 %vm457_vm1, %v1806_v20 }
 0x17b   : > { %v532_v51 = vpop.f32.mrb[0].mxu0  ;;  %v573_v52 = vpop.f32.mrb[0].mxu1 }
 0x17c   : > { %v534_v53 = vpop.f32.mrb[1].mxu0  ;;  %v575_v54 = vpop.f32.mrb[1].mxu1 }
 0x17d   : > { %v744_v55 = vmax.f32 %v532_v51, %v575_v54  ;;  %v536_v56 = vpop.f32.mrb[2].mxu0  ;;  %v577_v57 = vpop.f32.mrb[2].mxu1 }
 0x17e   : > { %v537_v58 = vpop.f32.mrb[3].mxu0  ;;  %v578_v59 = vpop.f32.mrb[3].mxu1 }
 0x187   : > { %v614_v60 = vpop.f32.mrb[4].mxu0  ;;  %v655_v61 = vpop.f32.mrb[4].mxu1 }
 0x188   : > { %v745_v62 = vmax.f32 %v534_v53, %v614_v60  ;;  %v616_v63 = vpop.f32.mrb[5].mxu0  ;;  %v657_v0 = vpop.f32.mrb[5].mxu1 }
 0x189   : > { %v746_v1 = vmax.f32 %v573_v52, %v616_v63  ;;  %v618_v2 = vpop.f32.mrb[6].mxu0  ;;  %v659_v3 = vpop.f32.mrb[6].mxu1 }
 0x18a   : > { %v619_v4 = vpop.f32.mrb[7].mxu0  ;;  %v660_v5 = vpop.f32.mrb[7].mxu1 }
 0x193   : > { %v696_v6 = vpop.f32.mrb[8].mxu0  ;;  %v737_v7 = vpop.f32.mrb[8].mxu1 }
 0x194   : > { %v748_v8 = vmax.f32 %v657_v0, %v737_v7  ;;  %v698_v9 = vpop.f32.mrb[9].mxu0  ;;  %v739_v11 = vpop.f32.mrb[9].mxu1 }
 0x195   : > { %v747_v12 = vmax.f32 %v655_v61, %v698_v9  ;;  %v749_v13 = vmax.f32 %v696_v6, %v739_v11  ;;  %v700_v14 = vpop.f32.mrb[10].mxu0  ;;  %v741_v15 = vpop.f32.mrb[10].mxu1 }
 0x196   : > { %v751_v16 = vmax.f32 %v745_v62, %v748_v8  ;;  %v701_v18 = vpop.f32.mrb[11].mxu0  ;;  %v742_v19 = vpop.f32.mrb[11].mxu1 }
 0x197   : > { %v750_v20 = vmax.f32 %v744_v55, %v747_v12  ;;  %v752_v22 = vmax.f32 %v746_v1, %v749_v13 }
 0x198   : > { %v772_v31 = vadd.f32 %v757_v17, %v751_v16 }
 0x199   : > { %v759_v23 = vadd.f32 %v757_v17, %v750_v20  ;;  %v785_v39 = vadd.f32 %v757_v17, %v752_v22 }
 0x19b   : > { %v761_v24 = vadd.f32 %v760_v21, %v759_v23 }
 0x19d   : > { %vm762_vm2 = vcmp.gt.f32.partialorder %v761_v24, 1.0 }
 0x19e   : > { %v763_v27 = vsel %vm762_vm2, 1.0, %v1506_v26 }
 0x19f   : > { %v764_v28 = vpack.c.bf16 %v763_v27, %v763_v27  ;;  %v767_v29 = vsub.f32 %v761_v24, %v763_v27 }
 0x1a1   : > { %765 = vst [vmem:[%s1784_s28] sm:$0xf] %v764_v28  ;;  %v771_v30 = vsel %vm770_vm3, %v767_v29, %v758_v10 }
 0x1a2   : > { %v773_v32 = vmul.f32 0.9, %v771_v30 }
 0x1a4   : > { %v774_v33 = vadd.f32 %v773_v32, %v772_v31 }
 0x1a6   : > { %vm775_vm4 = vcmp.gt.f32.partialorder %v774_v33, 1.0 }
 0x1a7   : > { %v776_v35 = vsel %vm775_vm4, 1.0, %v1506_v26 }
 0x1a8   : > { %v777_v36 = vpack.c.bf16 %v776_v35, %v776_v35  ;;  %v780_v37 = vsub.f32 %v774_v33, %v776_v35 }
 0x1aa   : > { %778 = vst [vmem:[%s1784_s28 + $0x4] sm:$0xf] %v777_v36  ;;  %v784_v38 = vsel %vm783_vm5, %v780_v37, %v771_v30 }
 0x1ab   : > { %v786_v40 = vmul.f32 0.9, %v784_v38 }
 0x1ad   : > { %v787_v41 = vadd.f32 %v786_v40, %v785_v39 }
 0x1ae   : > { %802 = sbr.rel (%p1053_p7) target bundleno = 445 (0x1bd), region = 52 }
 0x1af   : > { %vm788_vm6 = vcmp.gt.f32.partialorder %v787_v41, 1.0 }
 0x1b0   : > { %v789_v43 = vsel %vm788_vm6, 1.0, %v1506_v26 }
 0x1b1   : > { %v790_v44 = vpack.c.bf16 %v789_v43, %v789_v43  ;;  %v793_v45 = vsub.f32 %v787_v41, %v789_v43 }
 0x1b3   : > { %791 = vst [vmem:[%s1784_s28 + $0x8] sm:$0xf] %v790_v44  ;;  %v797_v46 = vsel %vm796_vm7, %v793_v45, %v784_v38 }
 0x1b4   : > { %798 = vst [vmem:[#allocation2] sm:$0xff] %v797_v46 }
 0x1bb   : > { %v803_v47 = vld [vmem:[#allocation2] sm:$0xff] }
 0x1bc   : > { %804 = vst [vmem:[%s269_s10] sm:$0xff] %v803_v47 }
 0x1bd PF: > { %s1071_s30 = smul.u32 6, %s1485_s22  ;;  %s827_s27 = sshll.u32 %s1784_s28, 4  ;;  %s1870_s27 = int_to_ptr.vmem [resolvable:$true] %s827_s27 }
 0x1be   : > { %s1056_s9 = sshll.u32 %s1485_s22, 7  ;;  %s806_s28 = scalar_lea.sflag [#allocation5], %s1764_s7 }
 0x1bf   : > { %s823_s1 = sadd.s32 %s1071_s30, %s753_s29  ;;  %s1881_s15 = scalar_lea.hbm %s1970_s4, %s1056_s9 }
 0x1c0   : > { %s1055_s13 = sshll.u32 %s823_s1, 6  ;;  %s1339_s21 = scalar_lea.vmem %s1870_s27, 192 }
 0x1c1   : > { %s1876_s5 = scalar_lea.hbm %s1969_s3, %s1055_s13  ;;  %p1340_p4 = scmp.ne.s32.totalorder %s1870_s27, %s1339_s21 }
 0x1c2   : > { %p2016_p3 = scmp.ne.s32.totalorder %s1997_s6, 0  ;;  %s1507_s29 = smov [#allocation9]  }
 0x1c3   : > { %s1343_s30 = sshll.u32 %s1507_s29, 4  ;;  %s1344_s30 = int_to_ptr.vmem [resolvable:$false] %s1343_s30 }
 0x1c4   : > { %p1341_p8 = pnand %p1340_p4, %p2016_p3  ;;  %s1345_s22 = scalar_lea.vmem %s1344_s30, 384 }
 0x1c5   : > { %p1346_p5 = scmp.lt.s32.totalorder %s1870_s27, %s1344_s30  ;;  %p1347_p9 = scmp.lt.s32.totalorder %s1345_s22, %s1339_s21 }
 0x1c6   : > { %p1342_p6 = pneg %p1341_p8 }
 0x1c7   : > { %p1348_p0 = por %p1347_p9, %p1346_p5 }
 0x1c9   : > { %p1349_p10 = pnand %p1348_p0, %p1342_p6 }
 0x1cb   : > { %1352 = shalt.err (!%p1349_p10)
}
 0x1cc   : > { %s1353_s7 = scalar_lea.hbm %s1876_s5, 192  ;;  %s1357_s9 = scalar_lea.hbm %s1969_s3, 768 }
 0x1cd   : > { %p1354_p1 = scmp.ne.s32.totalorder %s1876_s5, %s1353_s7  ;;  %p1358_p2 = scmp.lt.u32.totalorder %s1876_s5, %s1969_s3 }
 0x1ce   : > { %p1359_p11 = scmp.lt.u32.totalorder %s1357_s9, %s1353_s7  ;;  %p1361_p4 = scmp.lt.u32.totalorder %s1353_s7, %s1876_s5 }
 0x1cf   : > { %p1355_p12 = pnand %p1354_p1, %p2016_p3 }
 0x1d0   : > { %p1360_p7 = por %p1359_p11, %p1358_p2 }
 0x1d1   : > { %p1356_p13 = pneg %p1355_p12 }
 0x1d2   : > { %p1362_p8 = por %p1361_p4, %p1360_p7 }
 0x1d4   : > { %p1363_p6 = pnand %p1362_p8, %p1356_p13 }
 0x1d6   : > { %1366 = shalt.err (!%p1363_p6)
}
 0x1d7   : > { %s2017_s8 = sld [smem:[#allocation21_spill]]  ;;  %s840_s12 = sshll.u32 %s269_s10, 4  ;;  %s841_s12 = int_to_ptr.vmem [resolvable:$true] %s840_s12 }
 0x1d8   : > { %1082 = dma.vmem_to_hbm [thread:$0]  (%p2016_p3), %s1870_s27, 192, %s1876_s5, %s806_s28  }
 0x1d9   : > { %s811_s21 = scalar_lea.sflag [#allocation11], %s267_s11  ;;  %s1367_s29 = scalar_lea.vmem %s841_s12, 128 }
 0x1da   : > { %p1368_p5 = scmp.ne.s32.totalorder %s841_s12, %s1367_s29  ;;  %s1508_s30 = smov [#allocation10]  }
 0x1db   : > { %s1371_s22 = sshll.u32 %s1508_s30, 4  ;;  %s1372_s22 = int_to_ptr.vmem [resolvable:$false] %s1371_s22 }
 0x1dc   : > { %s1373_s6 = scalar_lea.vmem %s1372_s22, 256  ;;  %p1374_p1 = scmp.lt.s32.totalorder %s841_s12, %s1372_s22 }
 0x1dd   : > { %p2018_p9 = scmp.ne.s32.totalorder %s2017_s8, 0  ;;  %p1375_p12 = scmp.lt.s32.totalorder %s1373_s6, %s1367_s29 }
 0x1df   : > { %p1369_p0 = pnand %p1368_p5, %p2018_p9  ;;  %p1376_p13 = por %p1375_p12, %p1374_p1 }
 0x1e1   : > { %p1370_p10 = pneg %p1369_p0 }
 0x1e3   : > { %p1377_p2 = pnand %p1376_p13, %p1370_p10 }
 0x1e5   : > { %1380 = shalt.err (!%p1377_p2)
}
 0x1e6   : > { %s1381_s11 = scalar_lea.hbm %s1881_s15, 128  ;;  %s1385_s27 = scalar_lea.hbm %s1970_s4, 256 }
 0x1e7   : > { %p1382_p3 = scmp.ne.s32.totalorder %s1881_s15, %s1381_s11  ;;  %p1386_p4 = scmp.lt.u32.totalorder %s1881_s15, %s1970_s4 }
 0x1e8   : > { %p1387_p8 = scmp.lt.u32.totalorder %s1385_s27, %s1381_s11  ;;  %p1389_p5 = scmp.lt.u32.totalorder %s1381_s11, %s1881_s15 }
 0x1e9   : > { %p1383_p11 = pnand %p1382_p3, %p2018_p9 }
 0x1ea   : > { %p1388_p6 = por %p1387_p8, %p1386_p4 }
 0x1eb   : > { %p1384_p7 = pneg %p1383_p11 }
 0x1ec   : > { %p1390_p0 = por %p1389_p5, %p1388_p6 }
 0x1ee   : > { %p1391_p10 = pnand %p1390_p0, %p1384_p7 }
 0x1f0   : > { %1394 = shalt.err (!%p1391_p10)
}
 0x1f1   : > { %1083 = dma.vmem_to_hbm [thread:$0]  (%p2018_p9), %s841_s12, 128, %s1881_s15, %s811_s21  }
 0x1f2 PF: > { %s2019_s7 = sld [smem:[#allocation19_spill]]  ;;  %s2020_s1 = sld [smem:[#allocation17_spill]] }
 0x1f3   : > { %s2021_s13 = sld [smem:[#allocation20_spill]] }
 0x1f8   : > { %p1109_p1 = scmp.ge.s32.totalorder %s2019_s7, 2  ;;  %s852_s9 = sand.u32 1, %s2020_s1  }
 0x1f9   : > { %p2022_p12 = scmp.ne.s32.totalorder %s2021_s13, 0  ;;  %s853_s25 = scalar_lea.sflag [#allocation5], %s852_s9 }
 0x1fb   : > { %p1098_p13 = pnand %p1109_p1, %p2022_p12 }
 0x1fd   : > { %1448 = dma.done.wait (!%p1098_p13), %s853_s25, 192  }
 0x1fe   : > { %1450 = vsyncadd (!%p1098_p13), %s853_s25, 4294967104  ;;  %s2023_s2 = sld [smem:[#allocation16_spill]]  ;;  %s2024_s29 = sld [smem:[#allocation22_spill]] }
 0x204   : > { %s861_s30 = sand.u32 1, %s2023_s2   ;;  %p2025_p2 = scmp.ne.s32.totalorder %s2024_s29, 0 }
 0x205   : > { %s862_s22 = scalar_lea.sflag [#allocation11], %s861_s30 }
 0x206   : > { %p1101_p3 = pnand %p1109_p1, %p2025_p2 }
 0x208   : > { %1452 = dma.done.wait (!%p1101_p3), %s862_s22, 128  }
 0x209   : > { %1454 = vsyncadd (!%p1101_p3), %s862_s22, 4294967168  ;;  %s25_s25 = sadd.s32 1, %s2019_s7   ;;  %s2026_s21 = sld [smem:[#allocation18_spill]] }
 0x20a   : > { %p22_p9 = scmp.ge.s32.totalorder %s25_s25, 6   ;;  %s2027_s8 = sld [smem:[#allocation23_spill]] }
 0x20b   : > { %s2028_s12 = smov %s2043_s18  ;;  %s2029_s15 = smov %s1461_s16 }
 0x20c   : > { %s2030_s16 = smov %s1465_s17  ;;  %s2031_s17 = smov %s1724_s23 }
 0x20d   : > { %s2032_s18 = smov %s1473_s19  ;;  %s2033_s19 = smov %s1477_s20 }
 0x20e   : > { %s2034_s20 = smov %s1729_s14  ;;  %s2035_s22 = smov %s1493_s24 }
 0x20f   : > { %s2037_s24 = smov %s2028_s12  ;;  %24 = sbr.rel (!%p22_p9) target bundleno = 15 (0xf), region = 110 }
 0x210   : > { %s2036_s23 = smov %s2027_s8 }
 0x216   :  { %867 = vsyncpa [#allocation4], 1 }
 0x217   :  { %869 = vsyncpa [#allocation4 + $0x1], 1 }
 0x218   :  { %870 = vsyncpa [#allocation7], 1 }
 0x219   :  { %871 = vsyncpa [#allocation5], 1 }
 0x21a   :  { %873 = vsyncpa [#allocation5 + $0x1], 1 }
 0x21b   :  { %874 = vsyncpa [#allocation11], 1 }
 0x21c   :  { %876 = vsyncpa [#allocation11 + $0x1], 1 }

</bundles_post_ra>
